<compile_context>
chip_gen: v7x
topology: tpu7x:2x2x1
jax: 0.10.0
libtpu: 0.0.40
codegen_flags: <defaults>
</compile_context>

<pallas_src>
import jax
import jax.numpy as jnp
from jax.experimental import pallas as pl
from jax.experimental.pallas import tpu as pltpu

_LANE = 128


def _round_up(v, m):
    return ((v + m - 1) // m) * m


def _cdiv(a, b):
    return -(-a // b)


def _sublane(dtype):
    # Native sublane packing: 8 rows for 4-byte, 16 for 2-byte, 32 for 1-byte.
    return 8 * (4 // jnp.dtype(dtype).itemsize)


def _tpu_vmem_capacity():
    try:
        return int(pltpu.get_tpu_info().vmem_capacity_bytes)
    except Exception:
        return 64 * 1024 * 1024  # conservative (v7x-class) fallback


def _fit_tile(dim, tile, align):
    """Clamp `tile` to the (aligned) problem, then shrink it so the padded dim
    is minimal for the implied block count (avoids e.g. padding 640 -> 1024)."""
    dim_p = _round_up(dim, align)
    tile = max(align, min(tile, dim_p))
    nblk = _cdiv(dim, tile)
    return _round_up(_cdiv(dim, nblk), align)


# ---------------------------------------------------------------------------
# Kernels
# ---------------------------------------------------------------------------

def _fc_kernel_inplace(x_ref, w_ref, b_ref, o_ref):
    """f32 output: accumulate directly into the resident output tile."""
    k = pl.program_id(2)

    @pl.when(k == 0)
    def _init():
        # Fold the bias into the init: one broadcast per output tile.
        o_ref[...] = jnp.broadcast_to(b_ref[...].astype(o_ref.dtype),
                                      o_ref.shape)

    o_ref[...] += jnp.dot(x_ref[...], w_ref[...],
                          preferred_element_type=jnp.float32)


def _fc_kernel_acc(x_ref, w_ref, b_ref, o_ref, acc_ref):
    """Non-f32 output: keep an f32 accumulator scratch, cast on the last step."""
    k = pl.program_id(2)

    @pl.when(k == 0)
    def _init():
        acc_ref[...] = jnp.broadcast_to(b_ref[...].astype(jnp.float32),
                                        acc_ref.shape)

    acc_ref[...] += jnp.dot(x_ref[...], w_ref[...],
                            preferred_element_type=jnp.float32)

    @pl.when(k == pl.num_programs(2) - 1)
    def _finalize():
        o_ref[...] = acc_ref[...].astype(o_ref.dtype)


# ---------------------------------------------------------------------------
# Wrappers
# ---------------------------------------------------------------------------

def prepare_fc_params(w, b, *, dtype=None):
    """One-time parameter setup: transpose the PyTorch (out, in) weight to
    (in, out) and zero-pad both features to lane (128) multiples so the
    per-call path does not re-pad (full HBM pass over W) every forward."""
    n_out, n_in = w.shape
    w_t = w.T
    kp, npad = _round_up(n_in, _LANE), _round_up(n_out, _LANE)
    if (kp, npad) != (n_in, n_out):
        w_t = jnp.pad(w_t, ((0, kp - n_in), (0, npad - n_out)))
        b = jnp.pad(b, (0, npad - n_out))
    if dtype is not None:
        w_t = w_t.astype(dtype)
    return w_t, b, n_out


def fc_forward(x, w_t, b, *, out_features=None, tm=None, tn=None, tk=None,
               compute_dtype=None, vmem_limit_bytes=None):
    """y = x @ w_t + b via a tiled, output-stationary Pallas matmul.

    x:   (M, K)
    w_t: (K', N')  pre-transposed (and optionally pre-padded) PyTorch weight
    b:   (N'',)    bias (optionally pre-padded)
    out_features: logical N (defaults to w_t.shape[1]); extra columns sliced off
    compute_dtype: e.g. jnp.bfloat16 to run x/W through the MXU in bf16
                   (accumulation stays f32)
    """
    M, K = x.shape
    Kw, Nw = w_t.shape
    N = Nw if out_features is None else out_features
    assert Kw >= K and Nw >= N and b.shape[0] >= N

    out_dtype = x.dtype
    if compute_dtype is not None:
        x = x.astype(compute_dtype)
        w_t = w_t.astype(compute_dtype)
    itm_x = jnp.dtype(x.dtype).itemsize
    itm_w = jnp.dtype(w_t.dtype).itemsize
    out_itm = jnp.dtype(out_dtype).itemsize
    sub = _sublane(x.dtype)

    # ---- generation-aware tile defaults & VMEM budget -----------------------
    vmem_cap = _tpu_vmem_capacity()
    small_vmem = vmem_cap <= 72 * 1024 * 1024       # v7x-class (64 MiB / TC)
    if tm is None:
        tm = 512 if small_vmem else 1024
    if tn is None:
        tn = 512
    if tk is None:
        tk = 512

    tm = _fit_tile(M, tm, sub)
    tk = _fit_tile(Kw, tk, _LANE)
    tn = _fit_tile(Nw, tn, _LANE)

    # On dual-TensorCore parts only: if both parallel grid axes collapse to a
    # single block, split N (splitting N never duplicates the weight stream).
    if small_vmem and _cdiv(M, tm) == 1 and _cdiv(Nw, tn) == 1 and tn >= 2 * _LANE:
        tn = _round_up(_cdiv(tn, 2), _LANE)

    Mp, Kp, Np = _round_up(M, tm), _round_up(Kw, tk), _round_up(Nw, tn)

    # ---- conditional zero-padding (skipped when already aligned) ------------
    x_p = x if (Mp, Kp) == (M, K) else jnp.pad(x, ((0, Mp - M), (0, Kp - K)))
    w_p = w_t if (Kp, Np) == (Kw, Nw) else jnp.pad(
        w_t, ((0, Kp - Kw), (0, Np - Nw)))
    b_p = b if b.shape[0] == Np else jnp.pad(b, (0, Np - b.shape[0]))
    b_p = b_p.reshape(1, Np)

    grid = (Mp // tm, Np // tn, Kp // tk)
    k_steps = grid[2]

    # Deeper buffering on both streamed operands once there are enough K steps
    # to hide DMA latency behind the short per-tile MXU burst.
    stream_kwargs = {"pipeline_mode": pl.Buffered(3)} if k_steps >= 3 else {}
    x_spec = pl.BlockSpec((tm, tk), lambda i, j, k: (i, k), **stream_kwargs)
    w_spec = pl.BlockSpec((tk, tn), lambda i, j, k: (k, j), **stream_kwargs)
    b_spec = pl.BlockSpec((1, tn), lambda i, j, k: (0, j))
    o_spec = pl.BlockSpec((tm, tn), lambda i, j, k: (i, j))

    inplace = jnp.dtype(out_dtype) == jnp.dtype(jnp.float32)
    kernel = _fc_kernel_inplace if inplace else _fc_kernel_acc
    scratch = [] if inplace else [pltpu.VMEM((tm, tn), jnp.float32)]

    if vmem_limit_bytes is None:
        nbuf = 3 if k_steps >= 3 else 2
        est = (nbuf * tm * tk * itm_x                 # x tiles
               + nbuf * tk * tn * itm_w               # weight tiles
               + 2 * tm * tn * out_itm                # output tiles
               + 2 * tn * jnp.dtype(b_p.dtype).itemsize
               + (0 if inplace else tm * tn * 4))     # f32 accumulator
        cap = (48 << 20) if small_vmem else (100 << 20)
        vmem_limit_bytes = min(max(int(1.5 * est), 16 << 20), cap)

    cost = pl.CostEstimate(
        flops=2 * Mp * Np * Kp,
        transcendentals=0,
        bytes_accessed=(Mp * Kp * itm_x * grid[1]     # x re-read per N block
                        + Kp * Np * itm_w * grid[0]   # W re-read per M block
                        + Mp * Np * out_itm
                        + Np * jnp.dtype(b_p.dtype).itemsize),
    )

    out = pl.pallas_call(
        kernel,
        out_shape=jax.ShapeDtypeStruct((Mp, Np), out_dtype),
        grid_spec=pltpu.PrefetchScalarGridSpec(
            num_scalar_prefetch=0,
            grid=grid,
            in_specs=[x_spec, w_spec, b_spec],
            out_specs=o_spec,
            scratch_shapes=scratch,
        ),
        compiler_params=pltpu.CompilerParams(
            dimension_semantics=("parallel", "parallel", "arbitrary"),
            vmem_limit_bytes=vmem_limit_bytes,
        ),
        cost_estimate=cost,
    )(x_p, w_p, b_p)

    return out[:M, :N]


def fc(x, w_t, b, **kwargs):
    """FC forward with a size heuristic: tiny layers are overhead-dominated as
    a standalone Pallas call, so let XLA fuse them; use the kernel otherwise.
    Accepts >2D inputs by flattening the leading dims (like nn.Linear)."""
    orig_shape = x.shape
    if x.ndim != 2:
        x = x.reshape(-1, orig_shape[-1])
    M, K = x.shape
    N = w_t.shape[1]
    itm = jnp.dtype(x.dtype).itemsize
    if (K * N * itm) < (2 << 20) and (M * K * itm) < (2 << 20):
        y = (jnp.dot(x, w_t, preferred_element_type=jnp.float32)
             + b[:N].astype(jnp.float32)).astype(x.dtype)
    else:
        y = fc_forward(x, w_t, b, **kwargs)
    if len(orig_shape) != 2:
        y = y.reshape(*orig_shape[:-1], y.shape[-1])
    return y


if __name__ == "__main__":
    key = jax.random.PRNGKey(0)
    k1, k2, k3, k4, k5, k6, k7, k8, k9 = jax.random.split(key, 9)

    def make_params(kw, kb, input_size, num_classes):
        # PyTorch Linear default init: U(-1/sqrt(in), 1/sqrt(in)); weight is
        # stored (num_classes, input_size) like torch.
        bound = 1.0 / (input_size ** 0.5)
        w = jax.random.uniform(kw, (num_classes, input_size), jnp.float32,
                               -bound, bound)
        b = jax.random.uniform(kb, (num_classes,), jnp.float32, -bound, bound)
        return w, b

    # 1) The module's toy shape: FC(32 -> 16), batch=8, forced through Pallas.
    batch, input_size, num_classes = 8, 32, 16
    w, b = make_params(k2, k3, input_size, num_classes)
    x = jax.random.normal(k1, (batch, input_size), jnp.float32)
    y = jax.block_until_ready(fc_forward(x, w.T, b))
    y_ref = x @ w.T + b
    assert y.shape == (batch, num_classes)
    assert jnp.allclose(y, y_ref, atol=1e-5, rtol=1e-5)

    # 2) Multi-tile shape exercising M/N grid, K reduction, in-place f32
    #    accumulation and the pre-padded-weight (no per-call re-pad) path.
    M2, K2, N2 = 640, 256, 320
    w2, b2 = make_params(k5, k6, K2, N2)
    x2 = jax.random.normal(k4, (M2, K2), jnp.float32)
    w2_t, b2_p, n2_out = prepare_fc_params(w2, b2)
    y2 = jax.block_until_ready(
        fc_forward(x2, w2_t, b2_p, out_features=n2_out, tm=256, tn=128, tk=128))
    y2_ref = x2 @ w2.T + b2
    assert y2.shape == (M2, N2)
    assert jnp.allclose(y2, y2_ref, atol=1e-4, rtol=1e-4)

    # 3) bf16 compute path + multi-K-step streaming (Buffered(3) on x and W).
    M3, K3, N3 = 256, 512, 256
    w3, b3 = make_params(k8, k9, K3, N3)
    x3 = jax.random.normal(k7, (M3, K3), jnp.float32)
    y3 = jax.block_until_ready(
        fc_forward(x3, w3.T, b3, tk=128, compute_dtype=jnp.bfloat16))
    y3_ref = x3 @ w3.T + b3
    assert y3.shape == (M3, N3)
    assert jnp.allclose(y3, y3_ref, atol=5e-2, rtol=5e-2)

    # 4) Dispatcher path: tiny shape routes to a plain XLA dot, same numerics.
    y4 = jax.block_until_ready(fc(x, w.T, b))
    assert jnp.allclose(y4, y_ref, atol=1e-5, rtol=1e-5)

    print("KERNEL_OK")
</pallas_src>

<mosaic_0001>
module attributes {stable_mosaic.version = 11 : i64} {
  func.func @_fc_kernel_inplace(%arg0: i32, %arg1: i32, %arg2: i32, %arg3: memref<8x128xf32, #tpu.memory_space<vmem>>, %arg4: memref<128x128xf32, #tpu.memory_space<vmem>>, %arg5: memref<1x128xf32, #tpu.memory_space<vmem>>, %arg6: memref<8x128xf32, #tpu.memory_space<vmem>>) attributes {dimension_semantics = [#tpu.dimension_semantics<parallel>, #tpu.dimension_semantics<parallel>, #tpu.dimension_semantics<arbitrary>], iteration_bounds = array<i64: 1, 1, 1>, scalar_prefetch = 0 : i64, scratch_operands = 0 : i64, tpu.core_type = #tpu.core_type<tc>, window_params = [{transform_indices = @transform_0, window_bounds = array<i64: 8, 128>}, {transform_indices = @transform_1, window_bounds = array<i64: 128, 128>}, {transform_indices = @transform_2, window_bounds = array<i64: 1, 128>}, {transform_indices = @transform_3, window_bounds = array<i64: 8, 128>}]} {
    %c0_i32 = arith.constant 0 : i32
    %0 = arith.cmpi eq, %arg2, %c0_i32 : i32
    %1 = arith.extui %0 : i1 to i32
    %c0_i32_0 = arith.constant 0 : i32
    %2 = arith.cmpi ne, %1, %c0_i32_0 : i32
    scf.if %2 {
      %c0_8 = arith.constant 0 : index
      %c0_9 = arith.constant 0 : index
      %9 = vector.load %arg5[%c0_8, %c0_9] : memref<1x128xf32, #tpu.memory_space<vmem>>, vector<1x128xf32>
      %10 = vector.shape_cast %9 : vector<1x128xf32> to vector<1x128xf32>
      %11 = vector.broadcast %10 : vector<1x128xf32> to vector<8x128xf32>
      %c0_10 = arith.constant 0 : index
      %c0_11 = arith.constant 0 : index
      %12 = vector.load %arg6[%c0_10, %c0_11] : memref<8x128xf32, #tpu.memory_space<vmem>>, vector<8x128xf32>
      tpu.vector_store %arg6[%c0_10, %c0_11], %11 {strides = array<i32>} : memref<8x128xf32, #tpu.memory_space<vmem>>, vector<8x128xf32>,
    } else {
    }
    %c0 = arith.constant 0 : index
    %c0_1 = arith.constant 0 : index
    %3 = vector.load %arg6[%c0, %c0_1] : memref<8x128xf32, #tpu.memory_space<vmem>>, vector<8x128xf32>
    %c0_2 = arith.constant 0 : index
    %c0_3 = arith.constant 0 : index
    %4 = vector.load %arg3[%c0_2, %c0_3] : memref<8x128xf32, #tpu.memory_space<vmem>>, vector<8x128xf32>
    %c0_4 = arith.constant 0 : index
    %c0_5 = arith.constant 0 : index
    %5 = vector.load %arg4[%c0_4, %c0_5] : memref<128x128xf32, #tpu.memory_space<vmem>>, vector<128x128xf32>
    %cst = arith.constant dense<0.000000e+00> : vector<8x128xf32>
    %6 = tpu.matmul %4, %5, %cst {dimension_numbers = #tpu.dot_dimension_numbers<[1], [0], [0], [1], [0, 0, 1, 1], [], []>} : vector<8x128xf32>, vector<128x128xf32>, vector<8x128xf32> -> vector<8x128xf32>
    %7 = arith.addf %3, %6 : vector<8x128xf32>
    %c0_6 = arith.constant 0 : index
    %c0_7 = arith.constant 0 : index
    %8 = vector.load %arg6[%c0_6, %c0_7] : memref<8x128xf32, #tpu.memory_space<vmem>>, vector<8x128xf32>
    tpu.vector_store %arg6[%c0_6, %c0_7], %7 {strides = array<i32>} : memref<8x128xf32, #tpu.memory_space<vmem>>, vector<8x128xf32>,
    return
  }
  func.func @transform_0(%arg0: i32, %arg1: i32, %arg2: i32) -> (i32, i32) {
    %c0_i32 = arith.constant 0 : i32
    return %arg0, %arg2 : i32, i32
  }
  func.func @transform_1(%arg0: i32, %arg1: i32, %arg2: i32) -> (i32, i32) {
    %c0_i32 = arith.constant 0 : i32
    return %arg2, %arg1 : i32, i32
  }
  func.func @transform_2(%arg0: i32, %arg1: i32, %arg2: i32) -> (i32, i32) {
    %c0_i32 = arith.constant 0 : i32
    %c0_i32_0 = arith.constant 0 : i32
    return %c0_i32, %arg1 : i32, i32
  }
  func.func @transform_3(%arg0: i32, %arg1: i32, %arg2: i32) -> (i32, i32) {
    %c0_i32 = arith.constant 0 : i32
    return %arg0, %arg1 : i32, i32
  }
}

</mosaic_0001>

<bundles_post_ra>
// kernel: tpu_custom_call.1
= control target key start
LH: loop header
LB: loop body
LE: loop exit
PB: predicated region body
PF: predicated region fallthrough
CT: control target
= control target key end

     0   :  { %8 = vsyncpa [#allocation3], 0  ;;  %s390_s0 = inlined_call_operand.hbm [shape: f32[8,128], index: 0, kind: input, shape index: {}]   ;;  %s391_s1 = inlined_call_operand.hbm [shape: f32[128,128], index: 1, kind: input, shape index: {}]   ;;  %s392_s2 = inlined_call_operand.vmem [shape: f32[1,128], index: 2, kind: input, shape index: {}]   ;;  %s393_s3 = inlined_call_operand.hbm [shape: f32[8,128], index: 3, kind: output, shape index: {}]  }
   0x1   :  { %9 = vsyncpa [#allocation6], 0 }
   0x2   :  { %10 = vsyncpa [#allocation4], 0  ;;  %s316_s12 = smov [#allocation2]   ;;  %s317_s14 = smov [#allocation5]  }
   0x3   :  { %s17_s13 = sshll.u32 %s316_s12, 4  ;;  %s26_s15 = sshll.u32 %s317_s14, 4  ;;  %s18_s13 = int_to_ptr.vmem [resolvable:$true] %s17_s13  ;;  %s344_s15 = int_to_ptr.vmem [resolvable:$true] %s26_s15 }
   0x4   :  { %s244_s18 = scalar_lea.hbm %s390_s0, 128 }
   0x5   :  { %p245_p0 = scmp.ne.s32.totalorder %s390_s0, %s244_s18  ;;  %p248_p1 = scmp.lt.u32.totalorder %s244_s18, %s390_s0 }
   0x7   :  { %p250_p2 = pnand %p248_p1, %p245_p0 }
   0x9   :  { %253 = shalt.err (!%p250_p2)
}
   0xa   :  { %s254_s23 = scalar_lea.vmem %s18_s13, 128  ;;  %p259_p4 = scmp.lt.s32.totalorder %s18_s13, %s18_s13 }
   0xb   :  { %p255_p3 = scmp.ne.s32.totalorder %s18_s13, %s254_s23  ;;  %p260_p5 = scmp.lt.s32.totalorder %s254_s23, %s254_s23 }
   0xd   :  { %p261_p6 = por %p260_p5, %p259_p4 }
   0xf   :  { %p262_p7 = pnand %p261_p6, %p255_p3 }
  0x11   :  { %265 = shalt.err (!%p262_p7)
}
  0x12   :  { %20 = dma.hbm_to_vmem [thread:$0]  %s390_s0, 128, %s18_s13, [#allocation3]  }
  0x13   :  { %s266_s28 = scalar_lea.hbm %s391_s1, 2048 }
  0x14   :  { %p267_p8 = scmp.ne.s32.totalorder %s391_s1, %s266_s28  ;;  %p270_p9 = scmp.lt.u32.totalorder %s266_s28, %s391_s1 }
  0x16   :  { %p272_p10 = pnand %p270_p9, %p267_p8 }
  0x18   :  { %275 = shalt.err (!%p272_p10)
}
  0x19   :  { %s276_s6 = scalar_lea.vmem %s344_s15, 2048  ;;  %p281_p12 = scmp.lt.s32.totalorder %s344_s15, %s344_s15 }
  0x1a   :  { %p277_p11 = scmp.ne.s32.totalorder %s344_s15, %s276_s6  ;;  %p282_p13 = scmp.lt.s32.totalorder %s276_s6, %s276_s6 }
  0x1c   :  { %p283_p0 = por %p282_p13, %p281_p12 }
  0x1e   :  { %p284_p1 = pnand %p283_p0, %p277_p11 }
  0x20   :  { %287 = shalt.err (!%p284_p1)
}
  0x21   :  { %s318_s0 = smov 128   ;;  %s319_s7 = smov 8  }
  0x22   :  { %32 = dma.hbm_to_vmem [thread:$0]  %s391_s1, 2048, %s344_s15, [#allocation6], %s318_s0, %s318_s0, %s319_s7  }
  0x23   :  { %310 = dma.done.wait [#allocation3], 128  }
  0x24   :  { %311 = vsyncadd [#allocation3], 4294967168 }
  0x25   :  { %312 = dma.done.wait [#allocation6], 2048  }
  0x26   :  { %313 = vsyncadd [#allocation6], 4294965248  ;;  %v320_v0 = vmov 0.0|0.0   ;;  %vm321_vm0 = vmmov 0   ;;  %v322_v1 = vmov 0.0   ;;  %v55_v2 = vld [vmem:[#allocation5] sm:$0xff] }
  0x27   :  { %212 = vmatprep.subr.bf16.mxu0 %v320_v0  ;;  %209 = vmatprep.mubr.msk.f32.mxu0 %vm321_vm0, %v322_v1  ;;  %v56_v3 = vld [vmem:[#allocation5 + $0x8] sm:$0xff]  ;;  %v57_v4 = vld [vmem:[#allocation5 + $0x10] sm:$0xff]  ;;  %v58_v6 = vld [vmem:[#allocation5 + $0x18] sm:$0xff]  ;;  %s323_s11 = smov [#allocation7]  }
  0x28   :  { %v213_v5 = vpack.c.bf16 %v56_v3, %v55_v2  ;;  %v216_v7 = vpack.c.bf16 %v58_v6, %v57_v4  ;;  %v59_v8 = vld [vmem:[#allocation5 + $0x20] sm:$0xff]  ;;  %v60_v9 = vld [vmem:[#allocation5 + $0x28] sm:$0xff]  ;;  %v61_v11 = vld [vmem:[#allocation5 + $0x30] sm:$0xff]  ;;  %s149_s12 = sshll.u32 %s323_s11, 4  ;;  %s150_s12 = int_to_ptr.vmem [resolvable:$true] %s149_s12 }
  0x29   :  { %v219_v10 = vpack.c.bf16 %v60_v9, %v59_v8  ;;  %v62_v12 = vld [vmem:[#allocation5 + $0x38] sm:$0xff]  ;;  %v63_v14 = vld [vmem:[#allocation5 + $0x40] sm:$0xff]  ;;  %v64_v15 = vld [vmem:[#allocation5 + $0x48] sm:$0xff]  ;;  %s288_s13 = scalar_lea.vmem %s150_s12, 128  ;;  %p293_p3 = scmp.lt.s32.totalorder %s150_s12, %s150_s12 }
  0x2a   :  { %214 = vmatpush3.bf16.msra.mxu0 %v213_v5  ;;  %v222_v13 = vpack.c.bf16 %v62_v12, %v61_v11  ;;  %v225_v16 = vpack.c.bf16 %v64_v15, %v63_v14  ;;  %v65_v17 = vld [vmem:[#allocation5 + $0x50] sm:$0xff]  ;;  %v66_v18 = vld [vmem:[#allocation5 + $0x58] sm:$0xff]  ;;  %v67_v20 = vld [vmem:[#allocation5 + $0x60] sm:$0xff]  ;;  %p289_p2 = scmp.ne.s32.totalorder %s150_s12, %s288_s13  ;;  %p294_p4 = scmp.lt.s32.totalorder %s288_s13, %s288_s13 }
  0x2b   :  { %215 = vmatprep.subr.bf16.mxu0 %v320_v0  ;;  %v228_v19 = vpack.c.bf16 %v66_v18, %v65_v17  ;;  %v68_v21 = vld [vmem:[#allocation5 + $0x68] sm:$0xff]  ;;  %v69_v23 = vld [vmem:[#allocation5 + $0x70] sm:$0xff]  ;;  %v70_v24 = vld [vmem:[#allocation5 + $0x78] sm:$0xff] }
  0x2c   :  { %v231_v22 = vpack.c.bf16 %v68_v21, %v67_v20  ;;  %v234_v25 = vpack.c.bf16 %v70_v24, %v69_v23  ;;  %v54_v26 = vld [vmem:[#allocation2] sm:$0xff]  ;;  %p295_p5 = por %p294_p4, %p293_p3 }
  0x2d   :  { %v159_v27 = vld [vmem:[%s392_s2] ss:$0 sm:$0xff] }
  0x2e   :  { %217 = vmatpush3.bf16.msra.mxu0 %v216_v7  ;;  %p296_p6 = pnand %p295_p5, %p289_p2 }
  0x2f   :  { %218 = vmatprep.subr.bf16.mxu0 %v320_v0 }
  0x32   :  { %220 = vmatpush3.bf16.msra.mxu0 %v219_v10 }
  0x33   :  { %221 = vmatprep.subr.bf16.mxu0 %v320_v0 }
  0x36   :  { %223 = vmatpush3.bf16.msra.mxu0 %v222_v13 }
  0x37   :  { %224 = vmatprep.subr.bf16.mxu0 %v320_v0 }
  0x3a   :  { %226 = vmatpush3.bf16.msra.mxu0 %v225_v16 }
  0x3b   :  { %227 = vmatprep.subr.bf16.mxu0 %v320_v0 }
  0x3e   :  { %229 = vmatpush3.bf16.msra.mxu0 %v228_v19 }
  0x3f   :  { %230 = vmatprep.subr.bf16.mxu0 %v320_v0 }
  0x42   :  { %232 = vmatpush3.bf16.msra.mxu0 %v231_v22 }
  0x43   :  { %233 = vmatprep.subr.bf16.mxu0 %v320_v0 }
  0x46   :  { %235 = vmatpush3.bf16.msra.mxu0 %v234_v25 }
  0x49   :  { %210 = vmatmul.mubr.f32.vlgmr.msra.gmra.mrb[0].mxu0 %v54_v26 }
 0x11c   :  { %v137_v28 = vpop.f32.mrb[0].mxu0 }
 0x11d   :  { %v141_v29 = vadd.f32 %v159_v27, %v137_v28  ;;  %v211_v30 = vpop.f32.mrb[1].mxu0 }
 0x11f   :  { %142 = vst [vmem:[#allocation7] sm:$0xff] %v141_v29 }
 0x120   :  { %299 = shalt.err (!%p296_p6)
}
 0x121   :  { %s300_s16 = scalar_lea.hbm %s393_s3, 128 }
 0x122   :  { %p301_p7 = scmp.ne.s32.totalorder %s393_s3, %s300_s16  ;;  %p304_p8 = scmp.lt.u32.totalorder %s300_s16, %s393_s3 }
 0x124   :  { %p306_p9 = pnand %p304_p8, %p301_p7 }
 0x126   :  { %309 = shalt.err (!%p306_p9)
}
 0x127   :  { %152 = dma.vmem_to_hbm [thread:$0]  %s150_s12, 128, %s393_s3, [#allocation4]  }
 0x128   :  { %314 = dma.done.wait [#allocation4], 128  }
 0x129   :  { %315 = vsyncadd [#allocation4], 4294967168 }
 0x12a   :  { %156 = vsyncpa [#allocation3], 1 }
 0x12b   :  { %157 = vsyncpa [#allocation6], 1 }
 0x12c   :  { %158 = vsyncpa [#allocation4], 1 }

</bundles_post_ra>
